<compile_context>
chip_gen: v7x
topology: tpu7x:2x2x1
jax: 0.10.0
libtpu: 0.0.40
codegen_flags: <defaults>
</compile_context>

<pallas_src>
import functools

import jax
import jax.numpy as jnp
import numpy as np
from jax.experimental import pallas as pl
from jax.experimental.pallas import tpu as pltpu


def _round_up(x, m):
    return ((x + m - 1) // m) * m


def _default_vmem_limit_bytes():
    # ~48 MiB on v7x (64 MiB VMEM/TC), ~96-100 MiB on v5e/v6e (128 MiB), with headroom
    # left for Mosaic-internal scratch.
    cap = 128 * 1024 * 1024
    try:
        cap = int(pltpu.get_tpu_info().vmem_capacity_bytes)
    except Exception:
        pass
    return int(min((cap * 3) // 4, 100 * 1024 * 1024))


# ---------------------------------------------------------------------------
# Kernel 1: fused hypernetwork  out = |state @ W^T + b|  for ALL layers at once
# ---------------------------------------------------------------------------

def hyper_linear_kernel(state_ref, wT_ref, b_ref, o_ref):
    o_ref[...] = jnp.abs(
        jnp.dot(state_ref[...], wT_ref[...], preferred_element_type=jnp.float32)
        + b_ref[...]
    )


def hyper_linear(state, wT, b, *, col_tile=512):
    """state:(B,H), wT:(H,D), b:(1,D) -> (B, Dp), Dp = round_up(D, 128).

    Wide column tiles (512 where divisible) for HBM-bandwidth efficiency and
    lane-dense stores. Trailing pad columns have zero weights -> zero output and are
    never read by the caller (no whole-D fallback block that could blow VMEM).
    """
    B, H = state.shape
    D = wT.shape[1]
    Dp = _round_up(D, 128)
    if Dp != D:
        wT = jnp.pad(wT, ((0, 0), (0, Dp - D)))
        b = jnp.pad(b, ((0, 0), (0, Dp - D)))
    tc = 128
    for cand in (col_tile, 256, 128):
        if cand >= 128 and Dp % cand == 0:
            tc = cand
            break
    return pl.pallas_call(
        hyper_linear_kernel,
        out_shape=jax.ShapeDtypeStruct((B, Dp), jnp.float32),
        grid=(Dp // tc,),
        in_specs=[
            pl.BlockSpec((B, H), lambda j: (0, 0)),    # same block every step -> resident
            pl.BlockSpec((H, tc), lambda j: (0, j)),
            pl.BlockSpec((1, tc), lambda j: (0, j)),
        ],
        out_specs=pl.BlockSpec((B, tc), lambda j: (0, j)),
        compiler_params=pltpu.CompilerParams(dimension_semantics=("parallel",)),
    )(state, wT, b)


# ---------------------------------------------------------------------------
# Kernel 2: fully fused GAT (all heads + output layer + finalize)
# ---------------------------------------------------------------------------

def gat_fused_kernel(x_ref, adj_ref, wh_ref, ah_ref, wo_ref, ao_ref, o_ref, xcat_ref,
                     *, nhid, nclass, cpad, nheads, alpha, bt):
    neg = jnp.float32(-9e15)

    def elu(v):  # exp only on the non-positive branch (no inf on positives)
        return jnp.where(v > 0, v, jnp.exp(jnp.minimum(v, 0.0)) - 1.0)

    def attention_head(Wh, a1, a2, mask):
        # e[i, j] = leakyrelu((Wh@a1)[i] + (Wh@a2)[j]); softmax over i (axis 0).
        # The a-projections are cross-lane reductions -> XLU slot (free vs the
        # VALU-heavy N^2 softmax chain).
        Wh1 = jnp.sum(Wh * a1, axis=1, keepdims=True)               # (N, 1)
        Wh2 = jnp.sum(Wh[None, :, :] * a2[:, None, :], axis=2)      # (1, N)
        e = Wh1 + Wh2                                               # (N, N)
        e = jnp.maximum(e, alpha * e)                               # LeakyReLU (0<alpha<1)
        att = jnp.where(mask, e, neg)
        m = jnp.max(att, axis=0, keepdims=True)                     # (1, N)
        ex = jnp.exp(att - m)
        # Denominator fold on the EUP: N approx-reciprocals + N^2 multiplies,
        # not N^2 VALU divides.
        inv_s = pl.reciprocal(jnp.sum(ex, axis=0, keepdims=True), approx=True)
        return jnp.dot(ex * inv_s, Wh, preferred_element_type=jnp.float32)

    a_all = ah_ref[...]                                  # (nheads, 2*nhid)
    ao = ao_ref[...]                                     # (1, 2*cpad), class-padded w/ zeros
    ao1 = ao[:, :cpad]
    ao2 = ao[:, cpad:]
    class_mask = jax.lax.broadcasted_iota(jnp.int32, (1, cpad), 1) < nclass

    # TODO(synk): for large N on v7x, tile into row stripes with an online column-softmax.
    for bi in range(bt):                                 # static unroll over the batch block
        h0 = x_ref[bi]                                   # (N, Fin)
        # Mask straight from int8 (no f32 adj temp). NOTE: masked softmax assumes every
        # column has at least one adj>0 entry (self loops); adj assumed non-negative.
        mask = adj_ref[bi] > 0                           # (N, N) bool

        # ---- multi-head layer: ONE MXU pass for all heads ----
        Wh_all = jnp.dot(h0, wh_ref[bi], preferred_element_type=jnp.float32)  # (N, nheads*nhid)
        for hd in range(nheads):                         # static unroll
            Wh = Wh_all[:, hd * nhid:(hd + 1) * nhid]                         # (N, nhid)
            a_h = a_all[hd:hd + 1, :]                                         # (1, 2*nhid)
            hp = attention_head(Wh, a_h[:, :nhid], a_h[:, nhid:], mask)
            # concat=True -> ELU; write straight into the VMEM concat scratch
            # (bounds live ranges vs. a Python-list concat).
            xcat_ref[:, hd * nhid:(hd + 1) * nhid] = elu(hp)

        # ---- output GAT layer (concat=False); class dim padded to cpad lanes ----
        xcat = xcat_ref[...]                                                  # (N, nheads*nhid)
        Who = jnp.dot(xcat, wo_ref[bi], preferred_element_type=jnp.float32)   # (N, cpad)
        hp = attention_head(Who, ao1, ao2, mask)          # padded class cols stay exactly 0

        # ---- finalize: ELU -> log_softmax(node axis) -> masked softmax(class axis) ----
        y = elu(hp)
        m0 = jnp.max(y, axis=0, keepdims=True)
        lse = m0 + jnp.log(jnp.sum(jnp.exp(y - m0), axis=0, keepdims=True))
        ls = y - lse
        ls = jnp.where(class_mask, ls, jnp.float32(-1e30))    # exclude pad classes
        m1 = jnp.max(ls, axis=1, keepdims=True)
        exc = jnp.exp(ls - m1)
        inv = pl.reciprocal(jnp.sum(exc, axis=1, keepdims=True), approx=True)
        o_ref[bi] = exc * inv                                  # lane-dense (N, cpad) store


def gat_fused(x, adj, W_heads, a_heads, W_out, a_out, *, nhid, nclass, nheads, alpha,
              batch_block=None):
    B, N, Fin = x.shape
    Fcat = nhid * nheads
    Cpad = W_out.shape[-1]

    if batch_block is None:
        # Amortize the ~0.35us per-grid-step overhead for small problems while keeping
        # the per-step (double-buffered) input/output working set modest.
        # (On v7x, prefer B // bt to be a multiple of 2 for megacore load balance.)
        per_b = (N * Fin + Fin * Fcat + Fcat * Cpad + N * Cpad) * 4 + N * N
        bt = 1
        for cand in (8, 4, 2):
            if B % cand == 0 and 2 * cand * per_b <= 6 * 1024 * 1024:
                bt = cand
                break
    else:
        bt = batch_block
    assert B % bt == 0, (B, bt)

    kern = functools.partial(gat_fused_kernel, nhid=nhid, nclass=nclass, cpad=Cpad,
                             nheads=nheads, alpha=alpha, bt=bt)
    return pl.pallas_call(
        kern,
        out_shape=jax.ShapeDtypeStruct((B, N, Cpad), jnp.float32),
        grid=(B // bt,),
        in_specs=[
            pl.BlockSpec((bt, N, Fin), lambda b: (b, 0, 0)),        # x
            pl.BlockSpec((bt, N, N), lambda b: (b, 0, 0)),          # adj (int8)
            pl.BlockSpec((bt, Fin, Fcat), lambda b: (b, 0, 0)),     # per-batch head weights
            pl.BlockSpec((nheads, 2 * nhid), lambda b: (0, 0)),     # head 'a' (replicated)
            pl.BlockSpec((bt, Fcat, Cpad), lambda b: (b, 0, 0)),    # per-batch out weights (class-padded)
            pl.BlockSpec((1, 2 * Cpad), lambda b: (0, 0)),          # out 'a' (class-padded)
        ],
        out_specs=pl.BlockSpec((bt, N, Cpad), lambda b: (b, 0, 0)),
        scratch_shapes=[pltpu.VMEM((N, Fcat), jnp.float32)],        # head-concat buffer
        compiler_params=pltpu.CompilerParams(
            dimension_semantics=("parallel",),            # batch axis -> both TCs on v7x
            vmem_limit_bytes=_default_vmem_limit_bytes(),
        ),
    )(x, adj, W_heads, a_heads, W_out, a_out)


# ---------------------------------------------------------------------------
# GAT_hyper forward (Pallas)
# ---------------------------------------------------------------------------

def gat_hyper_forward(params, state, x, adj, *, nfeat, nhid, nclass, nheads, alpha):
    B, H = state.shape
    Fcat = nhid * nheads
    Cpad = _round_up(max(nclass, 1), 128)

    # --- pre-permute / pad hypernet columns (trace-time glue on tiny params) ---
    # Head weights: column order (f, head, o) so the (B, nfeat, Fcat) reshape of the
    # hypernet output *is* the lane-concatenated multi-head weight slab (no interleave).
    wh_T = jnp.stack([h["wp_wT"].reshape(H, nfeat, nhid) for h in params["heads"]],
                     axis=2).reshape(H, nfeat * Fcat)
    bh = jnp.stack([h["wp_b"].reshape(1, nfeat, nhid) for h in params["heads"]],
                   axis=2).reshape(1, nfeat * Fcat)
    # Output-layer weights: pad the class dim to Cpad lanes with zero columns so every
    # downstream matmul and the final store are lane-dense (|state@0 + 0| = 0).
    wo_T = jnp.pad(params["out"]["wp_wT"].reshape(H, Fcat, nclass),
                   ((0, 0), (0, 0), (0, Cpad - nclass))).reshape(H, Fcat * Cpad)
    bo = jnp.pad(params["out"]["wp_b"].reshape(1, Fcat, nclass),
                 ((0, 0), (0, 0), (0, Cpad - nclass))).reshape(1, Fcat * Cpad)
    wpT_all = jnp.concatenate([wh_T, wo_T], axis=1)
    b_all = jnp.concatenate([bh, bo], axis=1)

    # --- ONE hypernet call for every layer's weights (lane-dense output) ---
    w_flat = hyper_linear(state, wpT_all, b_all)                     # (B, Dp)
    off = nfeat * Fcat
    # Contiguous slices (no interleave); the reshapes are layout no-ops.
    W_heads = w_flat[:, :off].reshape(B, nfeat, Fcat)                # (B, nfeat, nheads*nhid)
    W_out = w_flat[:, off:off + Fcat * Cpad].reshape(B, Fcat, Cpad)  # (B, Fcat, Cpad)

    a_heads = jnp.concatenate([h["a"] for h in params["heads"]], axis=0)   # (nheads, 2*nhid)
    a_out = params["out"]["a"]                                             # (1, 2*nclass)
    a_out_p = jnp.zeros((1, 2 * Cpad), jnp.float32)
    a_out_p = a_out_p.at[:, :nclass].set(a_out[:, :nclass])
    a_out_p = a_out_p.at[:, Cpad:Cpad + nclass].set(a_out[:, nclass:])

    # (dropout on x / attention / xcat: identity, eval mode)
    out_pad = gat_fused(x, adj, W_heads, a_heads, W_out, a_out_p,
                        nhid=nhid, nclass=nclass, nheads=nheads, alpha=alpha)
    return out_pad[..., :nclass]


# ---------------------------------------------------------------------------
# Pure-JAX reference (for correctness check)
# ---------------------------------------------------------------------------

def gat_layer_ref(state, h, adj, wT, b, a, fin, fout, alpha, concat):
    B = state.shape[0]
    W = jnp.abs(state @ wT + b).reshape(B, fin, fout)
    Wh = jnp.einsum("bnf,bfo->bno", h, W)
    a1 = a[0, :fout]
    a2 = a[0, fout:]
    Wh1 = Wh @ a1                               # (B, N)
    Wh2 = Wh @ a2                               # (B, N)
    e = Wh1[:, :, None] + Wh2[:, None, :]
    e = jnp.where(e > 0, e, alpha * e)
    att = jnp.where(adj > 0, e, -9e15)
    att = jax.nn.softmax(att, axis=1)
    hp = jnp.einsum("bij,bjo->bio", att, Wh)
    if concat:
        hp = jnp.where(hp > 0, hp, jnp.exp(jnp.minimum(hp, 0.0)) - 1.0)
    return hp


def gat_hyper_ref(params, state, x, adj, *, nfeat, nhid, nclass, nheads, alpha):
    outs = [gat_layer_ref(state, x, adj, h["wp_wT"], h["wp_b"], h["a"],
                          nfeat, nhid, alpha, True) for h in params["heads"]]
    xcat = jnp.concatenate(outs, axis=-1)
    hp = gat_layer_ref(state, xcat, adj, params["out"]["wp_wT"],
                       params["out"]["wp_b"], params["out"]["a"],
                       nhid * nheads, nclass, alpha, False)
    y = jnp.where(hp > 0, hp, jnp.exp(jnp.minimum(hp, 0.0)) - 1.0)
    y = jax.nn.log_softmax(y, axis=1)
    return jax.nn.softmax(y, axis=-1)


# ---------------------------------------------------------------------------
# Deterministic parameter initialization
# ---------------------------------------------------------------------------

def xavier_uniform(key, fan_in, fan_out, shape, gain=1.414):
    bound = gain * np.sqrt(6.0 / (fan_in + fan_out))
    return jax.random.uniform(key, shape, jnp.float32, -bound, bound)


def make_layer_params(key, hyper_input_size, in_features, out_features):
    k1, k2, k3 = jax.random.split(key, 3)
    bound = 1.0 / np.sqrt(hyper_input_size)
    wp_wT = jax.random.uniform(k1, (hyper_input_size, in_features * out_features),
                               jnp.float32, -bound, bound)
    wp_b = jax.random.uniform(k2, (1, in_features * out_features),
                              jnp.float32, -bound, bound)
    a = xavier_uniform(k3, 2 * out_features, 1, (1, 2 * out_features))
    return {"wp_wT": wp_wT, "wp_b": wp_b, "a": a}


# ---------------------------------------------------------------------------

if __name__ == "__main__":
    B, N = 2, 8
    hyper_input_size = 16
    nfeat, nhid, nclass, nheads = 12, 8, 4, 2
    alpha = 0.2

    key = jax.random.PRNGKey(0)
    k_state, k_x, k_adj, k_params = jax.random.split(key, 4)

    state = jax.random.normal(k_state, (B, hyper_input_size), jnp.float32)
    x = jax.random.normal(k_x, (B, N, nfeat), jnp.float32)
    adj = (jax.random.uniform(k_adj, (B, N, N)) > 0.5)
    adj = jnp.logical_or(adj, jnp.eye(N, dtype=bool)[None])      # self loops
    adj = adj.astype(jnp.int8)                                   # int8 adjacency

    head_keys = jax.random.split(k_params, nheads + 1)
    params = {
        "heads": [make_layer_params(head_keys[i], hyper_input_size, nfeat, nhid)
                  for i in range(nheads)],
        "out": make_layer_params(head_keys[nheads], hyper_input_size,
                                 nhid * nheads, nclass),
    }

    out = gat_hyper_forward(params, state, x, adj, nfeat=nfeat, nhid=nhid,
                            nclass=nclass, nheads=nheads, alpha=alpha)
    out = jax.block_until_ready(out)

    ref = gat_hyper_ref(params, state, x, adj, nfeat=nfeat, nhid=nhid,
                        nclass=nclass, nheads=nheads, alpha=alpha)

    assert out.shape == (B, N, nclass), out.shape
    # Tolerance loosened for pl.reciprocal(approx=True) in the softmax denominators
    # (~1e-3-level relative drift vs the exact-divide reference).
    np.testing.assert_allclose(np.asarray(out), np.asarray(ref),
                               rtol=2e-2, atol=2e-3)
    print("KERNEL_OK")
</pallas_src>

<mosaic_0001>
module attributes {stable_mosaic.version = 11 : i64} {
  func.func @hyper_linear_kernel(%arg0: i32, %arg1: memref<2x16xf32, #tpu.memory_space<vmem>>, %arg2: memref<16x256xf32, #tpu.memory_space<vmem>>, %arg3: memref<1x256xf32, #tpu.memory_space<vmem>>, %arg4: memref<2x256xf32, #tpu.memory_space<vmem>>) attributes {dimension_semantics = [#tpu.dimension_semantics<parallel>], iteration_bounds = array<i64: 9>, scalar_prefetch = 0 : i64, scratch_operands = 0 : i64, tpu.core_type = #tpu.core_type<tc>, window_params = [{pipeline_mode = #tpu.pipeline_mode<synchronous>, transform_indices = @transform_0, window_bounds = array<i64: 2, 16>}, {transform_indices = @transform_1, window_bounds = array<i64: 16, 256>}, {transform_indices = @transform_2, window_bounds = array<i64: 1, 256>}, {transform_indices = @transform_3, window_bounds = array<i64: 2, 256>}]} {
    %c0 = arith.constant 0 : index
    %c0_0 = arith.constant 0 : index
    %0 = vector.load %arg1[%c0, %c0_0] : memref<2x16xf32, #tpu.memory_space<vmem>>, vector<2x16xf32>
    %c0_1 = arith.constant 0 : index
    %c0_2 = arith.constant 0 : index
    %1 = vector.load %arg2[%c0_1, %c0_2] : memref<16x256xf32, #tpu.memory_space<vmem>>, vector<16x256xf32>
    %cst = arith.constant dense<0.000000e+00> : vector<2x256xf32>
    %2 = tpu.matmul %0, %1, %cst {dimension_numbers = #tpu.dot_dimension_numbers<[1], [0], [0], [1], [0, 0, 1, 1], [], []>} : vector<2x16xf32>, vector<16x256xf32>, vector<2x256xf32> -> vector<2x256xf32>
    %c0_3 = arith.constant 0 : index
    %c0_4 = arith.constant 0 : index
    %3 = vector.load %arg3[%c0_3, %c0_4] : memref<1x256xf32, #tpu.memory_space<vmem>>, vector<1x256xf32>
    %4 = vector.broadcast %3 : vector<1x256xf32> to vector<2x256xf32>
    %5 = arith.addf %2, %4 : vector<2x256xf32>
    %6 = math.absf %5 : vector<2x256xf32>
    %c0_5 = arith.constant 0 : index
    %c0_6 = arith.constant 0 : index
    %7 = vector.load %arg4[%c0_5, %c0_6] : memref<2x256xf32, #tpu.memory_space<vmem>>, vector<2x256xf32>
    tpu.vector_store %arg4[%c0_5, %c0_6], %6 {strides = array<i32>} : memref<2x256xf32, #tpu.memory_space<vmem>>, vector<2x256xf32>,
    return
  }
  func.func @transform_0(%arg0: i32) -> (i32, i32) {
    %c0_i32 = arith.constant 0 : i32
    %c0_i32_0 = arith.constant 0 : i32
    %c0_i32_1 = arith.constant 0 : i32
    return %c0_i32, %c0_i32_0 : i32, i32
  }
  func.func @transform_1(%arg0: i32) -> (i32, i32) {
    %c0_i32 = arith.constant 0 : i32
    %c0_i32_0 = arith.constant 0 : i32
    return %c0_i32, %arg0 : i32, i32
  }
  func.func @transform_2(%arg0: i32) -> (i32, i32) {
    %c0_i32 = arith.constant 0 : i32
    %c0_i32_0 = arith.constant 0 : i32
    return %c0_i32, %arg0 : i32, i32
  }
  func.func @transform_3(%arg0: i32) -> (i32, i32) {
    %c0_i32 = arith.constant 0 : i32
    %c0_i32_0 = arith.constant 0 : i32
    return %c0_i32, %arg0 : i32, i32
  }
}

</mosaic_0001>

<bundles_post_ra>
// kernel: tpu_custom_call.1
= control target key start
LH: loop header
LB: loop body
LE: loop exit
PB: predicated region body
PF: predicated region fallthrough
CT: control target
= control target key end

     0   :  { %8 = vsyncpa [#allocation3], 0  ;;  %s979_s0 = inlined_call_operand.hbm [shape: f32[2,16], index: 0, kind: input, shape index: {}]   ;;  %s980_s1 = inlined_call_operand.hbm [shape: f32[16,2304], index: 1, kind: input, shape index: {}]   ;;  %s981_s2 = inlined_call_operand.hbm [shape: f32[1,2304], index: 2, kind: input, shape index: {}]   ;;  %s982_s3 = inlined_call_operand.hbm [shape: f32[2,2304], index: 3, kind: output, shape index: {}]  }
   0x1   :  { %9 = vsyncpa [#allocation6], 0 }
   0x2   :  { %11 = vsyncpa [#allocation6 + $0x1], 0 }
   0x3   :  { %12 = vsyncpa [#allocation4], 0 }
   0x4   :  { %14 = vsyncpa [#allocation4 + $0x1], 0  ;;  %s746_s12 = smov 0   ;;  %s748_s13 = smov 0  }
   0x5   :  { %s750_s14 = smov 0   ;;  %s752_s15 = smov 0  }
   0x6 LB: > { %s767_s16 = sadd.s32 1, %s716_s15   ;;  %s48_s17 = sadd.s32 1, %s712_s14  ;;  %s716_s15 = sphi %s752_s15, %s1008_s15   ;;  %s712_s14 = sphi %s750_s14, %s1007_s14   ;;  %s708_s13 = sphi %s748_s13, %s1006_s13   ;;  %s704_s12 = sphi %s746_s12, %s1005_s12  }
   0x7   : > { %s45_s18 = ssub.s32 %s716_s15, %s767_s16  ;;  %p55_p0 = scmp.ne.s32.totalorder %s712_s14, %s708_s13 }
   0x8   : > { %p46_p1 = scmp.eq.s32.totalorder %s45_s18, 0  ;;  %p56_p2 = scmp.eq.s32.totalorder %s716_s15, 0 }
   0x9   : > { %p518_p3 = scmp.lt.s32.totalorder %s716_s15, 9  ;;  %s148_s20 = sand.u32 1, %s716_s15  }
   0xa   : > { %s777_s19 = scalar_select %p46_p1, %s712_s14, %s48_s17  }
   0xb   : > { %p57_p4 = por %p56_p2, %p55_p0  ;;  %s150_s21 = sand.u32 1, %s712_s14  }
   0xc   : > { %s467_s22 = sshll.u32 %s150_s21, 5  ;;  %s485_s23 = sshll.u32 %s716_s15, 8 }
   0xd   : > { %s790_s26 = scalar_lea.hbm %s980_s1, %s485_s23  ;;  %s152_s27 = scalar_lea.vmem [#allocation5], %s467_s22 }
   0xe   : > { %s159_s28 = sshll.u32 %s152_s27, 4  ;;  %p792_p5 = pnand %p518_p3, %p57_p4  ;;  %s796_s28 = int_to_ptr.vmem [resolvable:$true] %s159_s28 }
   0xf   : > { %s798_s30 = scalar_lea.sflag [#allocation6], %s148_s20  ;;  %s558_s4 = scalar_lea.hbm %s790_s26, 512 }
  0x10   : > { %s990_s29 = scalar_select %p792_p5, 1, 0 }
  0x11   : > { %p559_p6 = scmp.ne.s32.totalorder %s790_s26, %s558_s4  ;;  %p984_p7 = pneg %p792_p5 }
  0x12   : > { %s563_s7 = scalar_lea.hbm %s980_s1, 4608  ;;  %p564_p10 = scmp.lt.u32.totalorder %s790_s26, %s980_s1 }
  0x13   : > { %p561_p8 = pnand %p984_p7, %p559_p6  ;;  %p565_p11 = scmp.lt.u32.totalorder %s563_s7, %s558_s4 }
  0x14   : > { %p567_p13 = scmp.lt.u32.totalorder %s558_s4, %s790_s26 }
  0x15   : > { %p562_p9 = pneg %p561_p8  ;;  %p566_p12 = por %p565_p11, %p564_p10 }
  0x17   : > { %p568_p1 = por %p567_p13, %p566_p12 }
  0x19   : > { %p569_p2 = pnand %p568_p1, %p562_p9 }
  0x1b   : > { %572 = shalt.err (!%p569_p2)
}
  0x1c   : > { %s573_s10 = scalar_lea.vmem %s796_s28, 512  ;;  %s718_s11 = smov [#allocation5]  }
  0x1d   : > { %p574_p3 = scmp.ne.s32.totalorder %s796_s28, %s573_s10  ;;  %s578_s17 = sshll.u32 %s718_s11, 4  ;;  %s579_s17 = int_to_ptr.vmem [resolvable:$false] %s578_s17 }
  0x1e   : > { %s580_s18 = scalar_lea.vmem %s579_s17, 1024  ;;  %p581_p8 = scmp.lt.s32.totalorder %s796_s28, %s579_s17 }
  0x1f   : > { %p576_p4 = pnand %p574_p3, %p984_p7  ;;  %p582_p10 = scmp.lt.s32.totalorder %s580_s18, %s573_s10 }
  0x21   : > { %p577_p6 = pneg %p576_p4  ;;  %p583_p11 = por %p582_p10, %p581_p8 }
  0x23   : > { %p584_p12 = pnand %p583_p11, %p577_p6 }
  0x25   : > { %587 = shalt.err (!%p584_p12)
}
  0x26   : > { %s719_s20 = smov 2304   ;;  %s720_s22 = smov 256  }
  0x27   : > { %s721_s23 = smov 16   ;;  %s827_s24 = sadd.s32 4294967295, %s716_s15  }
  0x28   : > { %509 = dma.hbm_to_vmem [thread:$0]  (!%p792_p5), %s790_s26, 512, %s796_s28, %s798_s30, %s719_s20, %s720_s22, %s721_s23  }
  0x29   : > { %s463_s25 = sadd.s32 4294967294, %s716_s15   ;;  %p61_p9 = scmp.ne.s32.totalorder %s708_s13, %s704_s12 }
  0x2a   : > { %p983_p13 = scmp.eq.s32.totalorder %s827_s24, 0  ;;  %p111_p1 = scmp.eq.s32.totalorder %s827_s24, 8 }
  0x2b   : > { %p117_p2 = scmp.eq.s32.totalorder %s463_s25, 8  ;;  %p464_p3 = scmp.ge.s32.totalorder %s716_s15, 1 }
  0x2c   : > { %p837_p4 = por %p983_p13, %p61_p9  ;;  %p844_p6 = por %p111_p1, %p55_p0 }
  0x2d   : > { %p848_p8 = por %p117_p2, %p61_p9  ;;  %p124_p10 = scmp.lt.s32.totalorder %s716_s15, 10 }
  0x2e   : > { %s991_s27 = scalar_select %p837_p4, 1, 0 }
  0x2f   : > { %s992_s26 = scalar_select %p844_p6, 1, 0 }
  0x30   : > { %s993_s28 = scalar_select %p848_p8, 1, 0 }
  0x31   : > { %p853_p11 = pnand %p464_p3, %p124_p10  ;;  %s722_s5 = smov [#allocation2]  }
  0x32   : > { %s137_s6 = sshll.u32 %s722_s5, 4  ;;  %s470_s7 = sshll.u32 %s150_s21, 1  ;;  %s138_s6 = int_to_ptr.vmem [resolvable:$true] %s137_s6 }
  0x33   : > { %s994_s4 = scalar_select %p853_p11, 1, 0 }
  0x34   : > { %p502_p12 = pneg %p853_p11  ;;  %s486_s8 = sshll.u32 %s716_s15, 5 }
  0x35   : > { %s173_s9 = scalar_lea.vmem [#allocation7], %s470_s7  ;;  %s871_s20 = scalar_lea.hbm %s981_s2, %s486_s8 }
  0x36   : > { %s181_s10 = sshll.u32 %s173_s9, 4  ;;  %p864_p0 = pnand %p502_p12, %p983_p13  ;;  %s873_s10 = int_to_ptr.vmem [resolvable:$true] %s181_s10 }
  0x37   : > { %s588_s23 = scalar_lea.hbm %s979_s0, 32 }
  0x38   : > { %p589_p9 = scmp.ne.s32.totalorder %s979_s0, %s588_s23  ;;  %p590_p1 = pneg %p864_p0 }
  0x39   : > { %p595_p10 = scmp.lt.u32.totalorder %s588_s23, %s979_s0 }
  0x3a   : > { %p591_p2 = pnand %p590_p1, %p589_p9 }
  0x3c   : > { %p592_p3 = pneg %p591_p2 }
  0x3e   : > { %p597_p12 = pnand %p595_p10, %p592_p3 }
  0x40   : > { %600 = shalt.err (!%p597_p12)
}
  0x41   : > { %s601_s8 = scalar_lea.vmem %s138_s6, 32  ;;  %p609_p6 = scmp.lt.s32.totalorder %s138_s6, %s138_s6 }
  0x42   : > { %p602_p13 = scmp.ne.s32.totalorder %s138_s6, %s601_s8  ;;  %p610_p4 = scmp.lt.s32.totalorder %s601_s8, %s601_s8 }
  0x44   : > { %p604_p7 = pnand %p602_p13, %p590_p1  ;;  %p611_p11 = por %p610_p4, %p609_p6 }
  0x46   : > { %p605_p8 = pneg %p604_p7 }
  0x48   : > { %p612_p5 = pnand %p611_p11, %p605_p8 }
  0x4a   : > { %615 = shalt.err (!%p612_p5)
}
  0x4b   : > { %505 = dma.hbm_to_vmem [thread:$0]  (!%p864_p0), %s979_s0, 32, %s138_s6, [#allocation3]  }
  0x4c   : > { %s616_s21 = scalar_lea.hbm %s871_s20, 32  ;;  %p996_p13 = scmp.ne.s32.totalorder %s990_s29, 0 }
  0x4d   : > { %p617_p9 = scmp.ne.s32.totalorder %s871_s20, %s616_s21  ;;  %s621_s25 = scalar_lea.hbm %s981_s2, 288 }
  0x4e   : > { %p997_p7 = pneg %p996_p13  ;;  %p622_p5 = scmp.lt.u32.totalorder %s871_s20, %s981_s2 }
  0x4f   : > { %p623_p4 = scmp.lt.u32.totalorder %s621_s25, %s616_s21  ;;  %p625_p8 = scmp.lt.u32.totalorder %s616_s21, %s871_s20 }
  0x50   : > { %p619_p1 = pnand %p617_p9, %p997_p7 }
  0x51   : > { %p624_p6 = por %p623_p4, %p622_p5 }
  0x52   : > { %p620_p2 = pneg %p619_p1 }
  0x53   : > { %p626_p11 = por %p625_p8, %p624_p6 }
  0x55   : > { %p627_p3 = pnand %p626_p11, %p620_p2 }
  0x57   : > { %630 = shalt.err (!%p627_p3)
}
  0x58   : > { %s631_s6 = scalar_lea.vmem %s873_s10, 32  ;;  %p998_p10 = pmov %p997_p7 }
  0x59   : > { %p632_p0 = scmp.ne.s32.totalorder %s873_s10, %s631_s6  ;;  %s723_s7 = smov [#allocation7]  }
  0x5a   : > { %s636_s9 = sshll.u32 %s723_s7, 4  ;;  %s637_s9 = int_to_ptr.vmem [resolvable:$false] %s636_s9 }
  0x5b   : > { %p634_p12 = pnand %p632_p0, %p998_p10  ;;  %s638_s8 = scalar_lea.vmem %s637_s9, 64 }
  0x5c   : > { %p639_p7 = scmp.lt.s32.totalorder %s873_s10, %s637_s9  ;;  %p640_p1 = scmp.lt.s32.totalorder %s638_s8, %s631_s6 }
  0x5d   : > { %p635_p9 = pneg %p634_p12 }
  0x5e   : > { %p641_p5 = por %p640_p1, %p639_p7 }
  0x60   : > { %p642_p4 = pnand %p641_p5, %p635_p9 }
  0x62   : > { %645 = shalt.err (!%p642_p4)
}
  0x63   : > { %512 = dma.hbm_to_vmem [thread:$0]  (!%p996_p13), %s871_s20, 32, %s873_s10, %s798_s30  }
  0x64   : > { %p999_p2 = scmp.ne.s32.totalorder %s994_s4, 0 }
  0x65   : > { %p1000_p6 = scmp.eq.s32.totalorder (!%p999_p2), %s827_s24, 0 }
  0x66   : > { %190 = sbr.rel (%p999_p2) target bundleno = 355 (0x163), region = 32 }
  0x6d   : > { %691 = dma.done.wait (%p1000_p6), [#allocation3], 32   ;;  %p1001_p8 = pmov %p1000_p6 }
  0x6e   : > { %s196_s17 = sand.u32 1, %s827_s24   ;;  %s923_s18 = sand.u32 1, %s708_s13  }
  0x6f   : > { %693 = vsyncadd (%p1001_p8), [#allocation3], 4294967264  ;;  %s475_s29 = sshll.u32 %s923_s18, 5  ;;  %s197_s21 = scalar_lea.sflag [#allocation6], %s196_s17 }
  0x70   : > { %s200_s22 = scalar_lea.vmem [#allocation5], %s475_s29  ;;  %p1002_p13 = scmp.ne.s32.totalorder %s991_s27, 0 }
  0x72   : > { %695 = dma.done.wait (%p1002_p13), %s197_s21, 544  }
  0x73   : > { %697 = vsyncadd (%p1002_p13), %s197_s21, 4294966752  ;;  %v724_v0 = vmov 0.0   ;;  %v242_v1 = vld [vmem:[%s200_s22 + $0x8] sm:$0xff]  ;;  %v244_v2 = vld [vmem:[%s200_s22 + $0x18] sm:$0xff]  ;;  %vm257_vm0 = vcmask 130048   ;;  %v247_v8 = vlaneseq  ;;  %s476_s30 = sshll.u32 %s923_s18, 1 }
  0x74   : > { %325 = vmatprep.mubr.f32.mxu0 %v724_v0  ;;  %v241_v3 = vld [vmem:[%s200_s22] sm:$0xff]  ;;  %v488_v4 = vpack.c.bf16 %v244_v2, %v242_v1  ;;  %v243_v5 = vld [vmem:[%s200_s22 + $0x10] sm:$0xff]  ;;  %v240_v7 = vld [vmem:[#allocation2] sm:$0x3]  ;;  %s209_s27 = scalar_lea.vmem [#allocation7], %s476_s30  ;;  %s477_s4 = sshll.u32 %s923_s18, 2 }
  0x75   : > { %v490_v6 = vpack.c.bf16 %v243_v5, %v241_v3  ;;  %v248_v9 = vshrl.u32 %v247_v8, 7  ;;  %v245_v11 = vld [vmem:[%s209_s27] sm:$0x3]  ;;  %s487_s10 = sshll.u32 %s827_s24, 6  ;;  %s236_s20 = scalar_lea.vmem [#allocation8], %s477_s4 }
  0x76   : > { %489 = vmatprep.subr.bf16.mxu0 %v488_v4  ;;  %s361_s23 = sshll.u32 %s236_s20, 4  ;;  %s936_s5 = scalar_lea.hbm %s982_s3, %s487_s10  ;;  %s938_s23 = int_to_ptr.vmem [resolvable:$true] %s361_s23 }
  0x77   : > { %491 = vmatpush1.bf16.msra.mxu0 %v490_v6  ;;  %v249_v10 = vsub.s32 0, %v248_v9  ;;  %v253_v12 = vsub.s32 1, %v248_v9  ;;  %s347_s6 = scalar_lea.sflag [#allocation4], %s923_s18  ;;  %s646_s7 = scalar_lea.vmem %s938_s23, 64 }
  0x78   : > { %p647_p11 = scmp.ne.s32.totalorder %s938_s23, %s646_s7  ;;  %p1003_p3 = scmp.ne.s32.totalorder %s992_s26, 0 }
  0x79   : > { %v250_v13 = vrot.slane %v245_v11, %v249_v10  ;;  %v254_v14 = vrot.slane %v245_v11, %v253_v12  ;;  %s725_s24 = smov [#allocation8]  }
  0x7a   : > { %478 = vmatmul.mubr.msk.f32.vlgmr.msra.gmra.mrb[0].mxu0 %vm257_vm0, %v240_v7  ;;  %p648_p0 = pnand %p647_p11, %p1003_p3  ;;  %s650_s9 = sshll.u32 %s725_s24, 4  ;;  %s651_s9 = int_to_ptr.vmem [resolvable:$false] %s650_s9 }
  0x7b   : > { %s652_s8 = scalar_lea.vmem %s651_s9, 128  ;;  %p653_p12 = scmp.lt.s32.totalorder %s938_s23, %s651_s9 }
  0x7c   : > { %p649_p10 = pneg %p648_p0  ;;  %p654_p9 = scmp.lt.s32.totalorder %s652_s8, %s646_s7 }
  0x7e   : > { %p655_p7 = por %p654_p9, %p653_p12 }
  0x80   : > { %p656_p1 = pnand %p655_p7, %p649_p10 }
 0x14d   : > { %v327_v15 = vpop.f32.mrb[0].mxu0 }
 0x14e   : > { %v328_v16 = vadd.f32 %v327_v15, %v250_v13  ;;  %v329_v17 = vpop.f32.mrb[1].mxu0 }
 0x14f   : > { %v330_v18 = vadd.f32 %v329_v17, %v254_v14 }
 0x150   : > { %v332_v19 = vand.u32 2147483647, %v328_v16 }
 0x151   : > { %v333_v20 = vand.u32 2147483647, %v330_v18 }
 0x153   : > { %v336_v21 = vcombine.low %v332_v19, %v333_v20 }
 0x155   : > { %479 = vst.sshfl [vmem:[%s236_s20] sm:$0x33 pattern:$0x76325410] %v336_v21 }
 0x156   : > { %659 = shalt.err (!%p656_p1)
}
 0x157   : > { %s660_s17 = scalar_lea.hbm %s936_s5, 64  ;;  %s664_s21 = scalar_lea.hbm %s982_s3, 576 }
 0x158   : > { %p661_p5 = scmp.ne.s32.totalorder %s936_s5, %s660_s17  ;;  %p665_p6 = scmp.lt.u32.totalorder %s936_s5, %s982_s3 }
 0x159   : > { %p666_p8 = scmp.lt.u32.totalorder %s664_s21, %s660_s17  ;;  %p668_p11 = scmp.lt.u32.totalorder %s660_s17, %s936_s5 }
 0x15a   : > { %p662_p4 = pnand %p661_p5, %p1003_p3 }
 0x15b   : > { %p667_p13 = por %p666_p8, %p665_p6 }
 0x15c   : > { %p663_p2 = pneg %p662_p4 }
 0x15d   : > { %p669_p0 = por %p668_p11, %p667_p13 }
 0x15f   : > { %p670_p10 = pnand %p669_p0, %p663_p2 }
 0x161   : > { %673 = shalt.err (!%p670_p10)
}
 0x162   : > { %500 = dma.vmem_to_hbm [thread:$0]  (%p1003_p3), %s938_s23, 64, %s936_s5, %s347_s6  }
 0x163 PF: > { %p520_p12 = scmp.ge.s32.totalorder %s716_s15, 2  ;;  %s373_s27 = sand.u32 1, %s704_s12  }
 0x164   : > { %p1004_p9 = scmp.ne.s32.totalorder %s993_s28, 0  ;;  %s374_s4 = scalar_lea.sflag [#allocation4], %s373_s27 }
 0x166   : > { %p514_p7 = pnand %p520_p12, %p1004_p9 }
 0x168   : > { %699 = dma.done.wait (!%p514_p7), %s374_s4, 64  }
 0x169   : > { %701 = vsyncadd (!%p514_p7), %s374_s4, 4294967232  ;;  %p17_p1 = scmp.ge.s32.totalorder %s767_s16, 11   ;;  %s1005_s12 = smov %s708_s13 }
 0x16a   : > { %s1006_s13 = smov %s712_s14  ;;  %s1007_s14 = smov %s777_s19 }
 0x16b   : > { %s1008_s15 = smov %s767_s16  ;;  %19 = sbr.rel (!%p17_p1) target bundleno = 6 (0x6), region = 93 }
 0x172   :  { %379 = vsyncpa [#allocation3], 1 }
 0x173   :  { %381 = vsyncpa [#allocation3 + $0x1], 1 }
 0x174   :  { %382 = vsyncpa [#allocation6], 1 }
 0x175   :  { %384 = vsyncpa [#allocation6 + $0x1], 1 }
 0x176   :  { %385 = vsyncpa [#allocation4], 1 }
 0x177   :  { %387 = vsyncpa [#allocation4 + $0x1], 1 }

</bundles_post_ra>
